<compile_context>
chip_gen: v7x
topology: tpu7x:2x2x1
jax: 0.10.0
libtpu: 0.0.40
codegen_flags: <defaults>
</compile_context>

<pallas_src>
import jax
import jax.numpy as jnp
from jax.experimental import pallas as pl
from jax.experimental.pallas import tpu as pltpu


# ---------------------------------------------------------------------------
# Kernels
# ---------------------------------------------------------------------------
def ffn_kernel_resident(x_ref, w1_ref, b1_ref, w2_ref, b2_ref, o_ref):
    """Weights fully resident in VMEM; grid = (row_tiles,)."""
    h = jnp.dot(x_ref[...], w1_ref[...], preferred_element_type=jnp.float32)
    h = jnp.maximum(h + b1_ref[...], 0.0)                     # (tm, d_ff) f32
    y = jnp.dot(h.astype(w2_ref.dtype), w2_ref[...],
                preferred_element_type=jnp.float32)
    o_ref[...] = (y + b2_ref[...]).astype(o_ref.dtype)


def ffn_kernel_chunked(x_ref, w1_ref, b1_ref, w2_ref, b2_ref, o_ref, acc_ref):
    """Weight-streaming fallback; grid = (row_tiles, d_ff_chunks), d_ff last."""
    k = pl.program_id(1)

    h = jnp.dot(x_ref[...], w1_ref[...], preferred_element_type=jnp.float32)
    h = jnp.maximum(h + b1_ref[...], 0.0)                     # (tm, tk) f32
    partial = jnp.dot(h.astype(w2_ref.dtype), w2_ref[...],
                      preferred_element_type=jnp.float32)     # (tm, d_model)

    @pl.when(k == 0)
    def _():
        # Initialize with the first partial product and fold the output bias
        # in here: no zero-fill pass, no epilogue bias add.
        acc_ref[...] = partial + b2_ref[...]

    @pl.when(k != 0)
    def _():
        acc_ref[...] = acc_ref[...] + partial

    @pl.when(k == pl.num_programs(1) - 1)
    def _():
        o_ref[...] = acc_ref[...].astype(o_ref.dtype)


# ---------------------------------------------------------------------------
# Tiling / VMEM helpers
# ---------------------------------------------------------------------------
def _round_up(x, m):
    return (x + m - 1) // m * m


def _vmem_budget_bytes():
    """Usable VMEM budget for this generation (v7x: 64 MiB phys, else 128)."""
    cap = 64 << 20  # conservative default if the query is unavailable
    try:
        info = pltpu.get_tpu_info()
        cap = int(getattr(info, "vmem_capacity_bytes", cap)) or cap
    except Exception:
        pass
    return int(cap * 0.80)  # headroom for compiler-internal scratch


def _vmem_estimate(row_tile, dff_tile, d_model, n_k, x_isz, out_isz, c_isz):
    resident = (n_k == 1)
    wbuf = 1 if resident else 2                       # weight-chunk buffer count
    est = 2 * row_tile * d_model * x_isz              # x tiles (double-buffered)
    est += 2 * row_tile * d_model * out_isz           # out tiles
    est += wbuf * d_model * dff_tile * c_isz          # W1^T chunk(s)
    est += wbuf * dff_tile * d_model * c_isz          # W2^T chunk(s)
    est += wbuf * 8 * dff_tile * 4 + 8 * d_model * 4  # biases (sublane-padded)
    est += row_tile * dff_tile * (4 + c_isz)          # live h (f32 + bf16 copy)
    if not resident:
        est += row_tile * d_model * 4                 # f32 accumulator scratch
    return est


def _select_tiles(M, d_model, d_ff_pad, x_isz, out_isz, c_isz, budget):
    """Return (row_tile, dff_tile). dff_tile == d_ff_pad <=> weights resident."""
    single_rt = _round_up(max(M, 8), 8) if M <= 1024 else None

    # --- Regime 1: weights fully resident (preferred: W1/W2 DMA'd once). ---
    # 512 rows already amortize per-step overhead; shrink only if VMEM-tight.
    rt_cands = ([single_rt] if single_rt else []) + [512, 256, 128]
    for rt in rt_cands:
        if _vmem_estimate(rt, d_ff_pad, d_model, 1,
                          x_isz, out_isz, c_isz) <= budget:
            return rt, d_ff_pad

    # --- Regime 2: stream weight chunks along a trailing reduction axis. ---
    # Weight HBM traffic scales with n_i, so keep row tiles large (>=1024
    # clears the v6e/v7x roofline); shrink dff_tile first, rows second.
    dff_cands = [c for c in (4096, 2048, 1024, 512, 256, 128)
                 if c < d_ff_pad and d_ff_pad % c == 0]
    rt_cands = ([single_rt] if single_rt else []) + [2048, 1024, 512, 256, 128]
    for rt in rt_cands:
        for dt in dff_cands:
            if _vmem_estimate(rt, dt, d_model, d_ff_pad // dt,
                              x_isz, out_isz, c_isz) <= budget:
                return rt, dt

    # Last resort (gigantic d_model): smallest tiles.
    return 128, (128 if (d_ff_pad > 128 and d_ff_pad % 128 == 0) else d_ff_pad)


# ---------------------------------------------------------------------------
# Weight prep (one-time, at model-load; NOT per forward call)
# ---------------------------------------------------------------------------
def prepare_ffn_params(w1, b1, w2, b2, compute_dtype=jnp.bfloat16):
    """PyTorch (out,in) Linear weights -> (in,out), MXU dtype, d_ff zero-padded."""
    w1 = jnp.asarray(w1)
    b1 = jnp.asarray(b1)
    w2 = jnp.asarray(w2)
    b2 = jnp.asarray(b2)
    d_ff = w1.shape[0]

    # Zero-pad d_ff to an MXU-friendly multiple (256 for v6e/v7x 2x256 MXU;
    # 128 minimum granule).  Exact: relu(0)=0 and the padded W2 rows are zero.
    granule = 256 if d_ff > 256 else 128
    pad = _round_up(d_ff, granule) - d_ff

    w1_t = w1.T.astype(compute_dtype)                   # (d_model, d_ff)
    w2_t = w2.T.astype(compute_dtype)                   # (d_ff, d_model)
    b1f = b1.astype(jnp.float32)
    if pad:
        w1_t = jnp.pad(w1_t, ((0, 0), (0, pad)))
        w2_t = jnp.pad(w2_t, ((0, pad), (0, 0)))
        b1f = jnp.pad(b1f, ((0, pad),))

    return {
        "w1_t": w1_t,                                    # (d_model, d_ff_pad)
        "b1": b1f.reshape(1, -1),                        # (1, d_ff_pad)  f32
        "w2_t": w2_t,                                    # (d_ff_pad, d_model)
        "b2": b2.astype(jnp.float32).reshape(1, -1),     # (1, d_model)   f32
    }


# ---------------------------------------------------------------------------
# Forward wrapper
# ---------------------------------------------------------------------------
def positionwise_feed_forward(x, params, *, row_tile=None, dff_tile=None):
    """x: (B, S, d_model). params: output of prepare_ffn_params."""
    w1_t, b1, w2_t, b2 = params["w1_t"], params["b1"], params["w2_t"], params["b2"]
    B, S, d_model = x.shape
    d_ff_pad = w1_t.shape[1]
    compute_dtype = w1_t.dtype
    out_dtype = x.dtype

    M = B * S
    c_isz = jnp.dtype(compute_dtype).itemsize
    x_isz = c_isz                                   # x is pre-cast below
    out_isz = jnp.dtype(out_dtype).itemsize

    budget = _vmem_budget_bytes()
    if row_tile is None or dff_tile is None:
        rt, dt = _select_tiles(M, d_model, d_ff_pad, x_isz, out_isz, c_isz, budget)
        row_tile = row_tile or rt
        dff_tile = dff_tile or dt
    assert d_ff_pad % dff_tile == 0

    # Cast activations to the compute dtype ONCE (halves x DMA bytes) and
    # zero-pad the ragged row dim so M is a multiple of the row tile.
    M_pad = _round_up(M, row_tile)
    x2d = x.reshape(M, d_model).astype(compute_dtype)
    if M_pad != M:
        x2d = jnp.pad(x2d, ((0, M_pad - M), (0, 0)))

    n_i = M_pad // row_tile
    n_k = d_ff_pad // dff_tile
    resident = (n_k == 1)

    est = _vmem_estimate(row_tile, dff_tile, d_model, n_k, x_isz, out_isz, c_isz)
    vmem_limit = min(max(est + (8 << 20), 32 << 20), budget)
    vmem_limit = int(max(vmem_limit, est + (4 << 20)))  # never starve explicit tiles

    def _single(shape, imap):
        # Constant-index operand: single-buffer to halve its VMEM footprint.
        return pl.BlockSpec(shape, imap, pipeline_mode=pl.Buffered(buffer_count=1))

    cost = pl.CostEstimate(
        flops=4 * M_pad * d_model * d_ff_pad,
        transcendentals=0,
        bytes_accessed=int(M_pad * d_model * (x_isz + out_isz)
                           + 2 * d_model * d_ff_pad * c_isz
                           + (d_ff_pad + d_model) * 4),
    )

    if resident:
        grid_spec = pltpu.PrefetchScalarGridSpec(
            num_scalar_prefetch=0,
            grid=(n_i,),
            in_specs=[
                pl.BlockSpec((row_tile, d_model), lambda i: (i, 0)),   # x tile
                _single((d_model, d_ff_pad), lambda i: (0, 0)),        # W1^T
                _single((1, d_ff_pad), lambda i: (0, 0)),              # b1
                _single((d_ff_pad, d_model), lambda i: (0, 0)),        # W2^T
                _single((1, d_model), lambda i: (0, 0)),               # b2
            ],
            out_specs=pl.BlockSpec((row_tile, d_model), lambda i: (i, 0)),
        )
        kernel = ffn_kernel_resident
        dims = ("parallel",)
    else:
        grid_spec = pltpu.PrefetchScalarGridSpec(
            num_scalar_prefetch=0,
            grid=(n_i, n_k),                       # reduction (d_ff) axis last
            in_specs=[
                pl.BlockSpec((row_tile, d_model), lambda i, k: (i, 0)),   # x tile
                pl.BlockSpec((d_model, dff_tile), lambda i, k: (0, k)),   # W1^T chunk
                pl.BlockSpec((1, dff_tile), lambda i, k: (0, k)),         # b1 chunk
                pl.BlockSpec((dff_tile, d_model), lambda i, k: (k, 0)),   # W2^T chunk
                _single((1, d_model), lambda i, k: (0, 0)),               # b2 (const)
            ],
            out_specs=pl.BlockSpec((row_tile, d_model), lambda i, k: (i, 0)),
            scratch_shapes=[pltpu.VMEM((row_tile, d_model), jnp.float32)],
        )
        kernel = ffn_kernel_chunked
        dims = ("parallel", "arbitrary")

    out = pl.pallas_call(
        kernel,
        out_shape=jax.ShapeDtypeStruct((M_pad, d_model), out_dtype),
        grid_spec=grid_spec,
        compiler_params=pltpu.CompilerParams(
            dimension_semantics=dims,
            vmem_limit_bytes=vmem_limit,
        ),
        cost_estimate=cost,
    )(x2d, w1_t, b1, w2_t, b2)

    if M_pad != M:
        out = out[:M]
    return out.reshape(B, S, d_model)


# ---------------------------------------------------------------------------
# Test harness
# ---------------------------------------------------------------------------
if __name__ == "__main__":
    # Small deterministic setup consistent with the module's forward:
    # x: (batch=2, seq=8, d_model=32); d_ff=64.
    # NOTE: production shapes should use d_model/d_ff multiples of 128/256;
    # these tiny dims are for the smoke test only (d_ff is zero-padded to 128).
    B, S, d_model, d_ff = 2, 8, 32, 64
    key = jax.random.PRNGKey(0)
    kx, kw1, kb1, kw2, kb2 = jax.random.split(key, 5)

    x = jax.random.normal(kx, (B, S, d_model), dtype=jnp.float32)
    # PyTorch nn.Linear parameter shapes: weight (out, in), bias (out,)
    w1 = jax.random.normal(kw1, (d_ff, d_model), dtype=jnp.float32) * 0.1
    b1 = jax.random.normal(kb1, (d_ff,), dtype=jnp.float32) * 0.1
    w2 = jax.random.normal(kw2, (d_model, d_ff), dtype=jnp.float32) * 0.1
    b2 = jax.random.normal(kb2, (d_model,), dtype=jnp.float32) * 0.1

    # One-time weight prep (transpose + bf16 cast + d_ff pad), then the kernel.
    params = prepare_ffn_params(w1, b1, w2, b2, compute_dtype=jnp.bfloat16)
    y = positionwise_feed_forward(x, params)
    y = jax.block_until_ready(y)

    # Pure-JAX f32 reference (norm is identity, dropout is None in the module).
    h_ref = jnp.maximum(x @ w1.T + b1, 0.0)
    y_ref = h_ref @ w2.T + b2

    assert y.shape == (B, S, d_model)
    # bf16 MXU compute vs. f32 reference -> loosened tolerance.
    assert jnp.allclose(y.astype(jnp.float32), y_ref, atol=5e-2, rtol=5e-2), (
        float(jnp.max(jnp.abs(y.astype(jnp.float32) - y_ref))))

    print("KERNEL_OK")
</pallas_src>

<mosaic_0001>
module attributes {stable_mosaic.version = 11 : i64} {
  func.func @ffn_kernel_resident(%arg0: i32, %arg1: memref<16x32xbf16, #tpu.memory_space<vmem>>, %arg2: memref<32x128xbf16, #tpu.memory_space<vmem>>, %arg3: memref<1x128xf32, #tpu.memory_space<vmem>>, %arg4: memref<128x32xbf16, #tpu.memory_space<vmem>>, %arg5: memref<1x32xf32, #tpu.memory_space<vmem>>, %arg6: memref<16x32xf32, #tpu.memory_space<vmem>>) attributes {dimension_semantics = [#tpu.dimension_semantics<parallel>], iteration_bounds = array<i64: 1>, scalar_prefetch = 0 : i64, scratch_operands = 0 : i64, tpu.core_type = #tpu.core_type<tc>, window_params = [{transform_indices = @transform_0, window_bounds = array<i64: 16, 32>}, {pipeline_mode = #tpu.pipeline_mode<synchronous>, transform_indices = @transform_1, window_bounds = array<i64: 32, 128>}, {pipeline_mode = #tpu.pipeline_mode<synchronous>, transform_indices = @transform_2, window_bounds = array<i64: 1, 128>}, {pipeline_mode = #tpu.pipeline_mode<synchronous>, transform_indices = @transform_3, window_bounds = array<i64: 128, 32>}, {pipeline_mode = #tpu.pipeline_mode<synchronous>, transform_indices = @transform_4, window_bounds = array<i64: 1, 32>}, {transform_indices = @transform_5, window_bounds = array<i64: 16, 32>}]} {
    %c0 = arith.constant 0 : index
    %c0_0 = arith.constant 0 : index
    %0 = vector.load %arg1[%c0, %c0_0] : memref<16x32xbf16, #tpu.memory_space<vmem>>, vector<16x32xbf16>
    %c0_1 = arith.constant 0 : index
    %c0_2 = arith.constant 0 : index
    %1 = vector.load %arg2[%c0_1, %c0_2] : memref<32x128xbf16, #tpu.memory_space<vmem>>, vector<32x128xbf16>
    %cst = arith.constant dense<0.000000e+00> : vector<16x128xf32>
    %2 = tpu.matmul %0, %1, %cst {dimension_numbers = #tpu.dot_dimension_numbers<[1], [0], [0], [1], [0, 0, 1, 1], [], []>} : vector<16x32xbf16>, vector<32x128xbf16>, vector<16x128xf32> -> vector<16x128xf32>
    %c0_3 = arith.constant 0 : index
    %c0_4 = arith.constant 0 : index
    %3 = vector.load %arg3[%c0_3, %c0_4] : memref<1x128xf32, #tpu.memory_space<vmem>>, vector<1x128xf32>
    %4 = vector.broadcast %3 : vector<1x128xf32> to vector<16x128xf32>
    %5 = arith.addf %2, %4 : vector<16x128xf32>
    %cst_5 = arith.constant 0.000000e+00 : f32
    %6 = vector.broadcast %cst_5 : f32 to vector<16x128xf32>
    %7 = arith.maximumf %5, %6 : vector<16x128xf32>
    %8 = arith.truncf %7 : vector<16x128xf32> to vector<16x128xbf16>
    %c0_6 = arith.constant 0 : index
    %c0_7 = arith.constant 0 : index
    %9 = vector.load %arg4[%c0_6, %c0_7] : memref<128x32xbf16, #tpu.memory_space<vmem>>, vector<128x32xbf16>
    %cst_8 = arith.constant dense<0.000000e+00> : vector<16x32xf32>
    %10 = tpu.matmul %8, %9, %cst_8 {dimension_numbers = #tpu.dot_dimension_numbers<[1], [0], [0], [1], [0, 0, 1, 1], [], []>} : vector<16x128xbf16>, vector<128x32xbf16>, vector<16x32xf32> -> vector<16x32xf32>
    %c0_9 = arith.constant 0 : index
    %c0_10 = arith.constant 0 : index
    %11 = vector.load %arg5[%c0_9, %c0_10] : memref<1x32xf32, #tpu.memory_space<vmem>>, vector<1x32xf32>
    %12 = vector.broadcast %11 : vector<1x32xf32> to vector<16x32xf32>
    %13 = arith.addf %10, %12 : vector<16x32xf32>
    %c0_11 = arith.constant 0 : index
    %c0_12 = arith.constant 0 : index
    %14 = vector.load %arg6[%c0_11, %c0_12] : memref<16x32xf32, #tpu.memory_space<vmem>>, vector<16x32xf32>
    tpu.vector_store %arg6[%c0_11, %c0_12], %13 {strides = array<i32>} : memref<16x32xf32, #tpu.memory_space<vmem>>, vector<16x32xf32>,
    return
  }
  func.func @transform_0(%arg0: i32) -> (i32, i32) {
    %c0_i32 = arith.constant 0 : i32
    %c0_i32_0 = arith.constant 0 : i32
    return %arg0, %c0_i32 : i32, i32
  }
  func.func @transform_1(%arg0: i32) -> (i32, i32) {
    %c0_i32 = arith.constant 0 : i32
    %c0_i32_0 = arith.constant 0 : i32
    %c0_i32_1 = arith.constant 0 : i32
    return %c0_i32, %c0_i32_0 : i32, i32
  }
  func.func @transform_2(%arg0: i32) -> (i32, i32) {
    %c0_i32 = arith.constant 0 : i32
    %c0_i32_0 = arith.constant 0 : i32
    %c0_i32_1 = arith.constant 0 : i32
    return %c0_i32, %c0_i32_0 : i32, i32
  }
  func.func @transform_3(%arg0: i32) -> (i32, i32) {
    %c0_i32 = arith.constant 0 : i32
    %c0_i32_0 = arith.constant 0 : i32
    %c0_i32_1 = arith.constant 0 : i32
    return %c0_i32, %c0_i32_0 : i32, i32
  }
  func.func @transform_4(%arg0: i32) -> (i32, i32) {
    %c0_i32 = arith.constant 0 : i32
    %c0_i32_0 = arith.constant 0 : i32
    %c0_i32_1 = arith.constant 0 : i32
    return %c0_i32, %c0_i32_0 : i32, i32
  }
  func.func @transform_5(%arg0: i32) -> (i32, i32) {
    %c0_i32 = arith.constant 0 : i32
    %c0_i32_0 = arith.constant 0 : i32
    return %arg0, %c0_i32 : i32, i32
  }
}

</mosaic_0001>

<bundles_post_ra>
// kernel: tpu_custom_call.1
= control target key start
LH: loop header
LB: loop body
LE: loop exit
PB: predicated region body
PF: predicated region fallthrough
CT: control target
= control target key end

     0   :  { %v324_v1 = vmov 0.0   ;;  %vm325_vm0 = vmmov 0   ;;  %vm52_vm1 = vcmask 261120   ;;  %s413_s0 = inlined_call_operand.vmem [shape: bf16[16,32], index: 0, kind: input, shape index: {}]   ;;  %s414_s1 = inlined_call_operand.vmem [shape: bf16[32,128], index: 1, kind: input, shape index: {}]   ;;  %s415_s2 = inlined_call_operand.vmem [shape: f32[1,128], index: 2, kind: input, shape index: {}]   ;;  %s416_s3 = inlined_call_operand.vmem [shape: bf16[128,32], index: 3, kind: input, shape index: {}]   ;;  %s417_s4 = inlined_call_operand.vmem [shape: f32[1,32], index: 4, kind: input, shape index: {}]   ;;  %s418_s5 = inlined_call_operand.hbm [shape: f32[16,32], index: 5, kind: output, shape index: {}]  }
   0x1   :  { %v289_v0 = vld [vmem:[%s414_s1] sm:$0xff]   ;;  %256 = vmatprep.subr.bf16.mxu0 %v324_v1  ;;  %264 = vmatprep.subr.bf16.mxu1 %v324_v1  ;;  %v290_v2 = vld [vmem:[%s414_s1 + $0x8] sm:$0xff]   ;;  %v294_v6 = vld [vmem:[%s416_s3 + $0x10] sm:$0xff]  }
   0x2   :  { %257 = vmatpush3.bf16.msra.mxu0 %v289_v0  ;;  %260 = vmatprep.mubr.msk.bf16.mxu0 %vm325_vm0, %v324_v1  ;;  %v292_v3 = vld [vmem:[%s416_s3] sm:$0xff]   ;;  %v293_v5 = vld [vmem:[%s416_s3 + $0x8] sm:$0xff]  }
   0x3   :  { %258 = vmatprep.subr.bf16.mxu0 %v324_v1  ;;  %280 = vmatprep.mubr.msk.bf16.mxu1 %vm325_vm0, %v324_v1  ;;  %v291_v4 = vld [vmem:[%s413_s0] sm:$0xff]  }
   0x4   :  { %265 = vmatpush3.bf16.msra.mxu1 %v292_v3 }
   0x5   :  { %266 = vmatprep.subr.bf16.mxu1 %v324_v1 }
   0x6   :  { %259 = vmatpush3.bf16.msra.mxu0 %v290_v2 }
   0x8   :  { %267 = vmatpush3.bf16.msra.mxu1 %v293_v5 }
   0x9   :  { %261 = vmatmul.mubr.msk.bf16.vlgmr.msra.gmra.mrb[0].mxu0 %vm52_vm1, %v291_v4  ;;  %268 = vmatprep.subr.bf16.mxu1 %v324_v1 }
   0xa   :  { %10 = vsyncpa [#allocation3], 0  ;;  %v295_v7 = vld [vmem:[%s416_s3 + $0x18] sm:$0xff]   ;;  %v296_v8 = vld [vmem:[%s416_s3 + $0x20] sm:$0xff]  }
   0xb   :  { %v297_v9 = vld [vmem:[%s416_s3 + $0x28] sm:$0xff]   ;;  %v298_v10 = vld [vmem:[%s416_s3 + $0x30] sm:$0xff]   ;;  %v299_v11 = vld [vmem:[%s416_s3 + $0x38] sm:$0xff]   ;;  %s326_s3 = smov [#allocation2]  }
   0xc   :  { %269 = vmatpush3.bf16.msra.mxu1 %v294_v6  ;;  %v230_v12 = vld [vmem:[%s415_s2] ss:$0 sm:$0xff]  ;;  %s219_s17 = sshll.u32 %s326_s3, 4  ;;  %s220_s17 = int_to_ptr.vmem [resolvable:$true] %s219_s17 }
   0xd   :  { %270 = vmatprep.subr.bf16.mxu1 %v324_v1  ;;  %v235_v22 = vld [vmem:[%s417_s4] ss:$0 sm:$0xff]  ;;  %s300_s2 = scalar_lea.vmem %s220_s17, 256  ;;  %p305_p1 = scmp.lt.s32.totalorder %s220_s17, %s220_s17 }
   0xe   :  { %p301_p0 = scmp.ne.s32.totalorder %s220_s17, %s300_s2  ;;  %p306_p2 = scmp.lt.s32.totalorder %s300_s2, %s300_s2 }
  0x10   :  { %271 = vmatpush3.bf16.msra.mxu1 %v295_v7  ;;  %p307_p3 = por %p306_p2, %p305_p1 }
  0x11   :  { %272 = vmatprep.subr.bf16.mxu1 %v324_v1 }
  0x12   :  { %p308_p4 = pnand %p307_p3, %p301_p0 }
  0x14   :  { %273 = vmatpush3.bf16.msra.mxu1 %v296_v8 }
  0x15   :  { %274 = vmatprep.subr.bf16.mxu1 %v324_v1 }
  0x18   :  { %275 = vmatpush3.bf16.msra.mxu1 %v297_v9 }
  0x19   :  { %276 = vmatprep.subr.bf16.mxu1 %v324_v1 }
  0x1c   :  { %277 = vmatpush3.bf16.msra.mxu1 %v298_v10 }
  0x1d   :  { %278 = vmatprep.subr.bf16.mxu1 %v324_v1 }
  0x20   :  { %279 = vmatpush3.bf16.msra.mxu1 %v299_v11 }
  0xdc   :  { %v90_v13 = vpop.f32.mrb[0].mxu0 }
  0xdd   :  { %v91_v14 = vadd.f32 %v230_v12, %v90_v13  ;;  %v262_v15 = vpop.f32.mrb[1].mxu0 }
  0xde   :  { %v93_v16 = vpop.f32.mrb[2].mxu0 }
  0xdf   :  { %v94_v17 = vadd.f32 %v230_v12, %v93_v16  ;;  %v263_v18 = vpop.f32.mrb[3].mxu0  ;;  %v97_v19 = vmax.f32 %v91_v14, 0.0 }
  0xe1   :  { %v98_v20 = vmax.f32 %v94_v17, 0.0 }
  0xe3   :  { %v99_v21 = vpack.c.bf16 %v98_v20, %v97_v19 }
  0xe5   :  { %281 = vmatmul.mubr.bf16.vlgmr.msra.gmra.mrb[0].mxu1 %v99_v21 }
 0x1b8   :  { %v205_v23 = vpop.f32.mrb[0].mxu1 }
 0x1b9   :  { %v206_v24 = vadd.f32 %v235_v22, %v205_v23  ;;  %v282_v25 = vpop.f32.mrb[1].mxu1 }
 0x1ba   :  { %v208_v26 = vpop.f32.mrb[2].mxu1 }
 0x1bb   :  { %212 = vst.msk [vmem:[#allocation2] sm:$0xff] %vm52_vm1, %v206_v24  ;;  %v209_v27 = vadd.f32 %v235_v22, %v208_v26  ;;  %v283_v28 = vpop.f32.mrb[3].mxu1 }
 0x1bd   :  { %213 = vst.msk [vmem:[#allocation2 + $0x8] sm:$0xff] %vm52_vm1, %v209_v27 }
 0x1be   :  { %311 = shalt.err (!%p308_p4)
}
 0x1bf   :  { %s312_s19 = scalar_lea.hbm %s418_s5, 256 }
 0x1c0   :  { %p313_p5 = scmp.ne.s32.totalorder %s418_s5, %s312_s19  ;;  %p316_p6 = scmp.lt.u32.totalorder %s312_s19, %s418_s5 }
 0x1c2   :  { %p318_p7 = pnand %p316_p6, %p313_p5 }
 0x1c4   :  { %321 = shalt.err (!%p318_p7)
}
 0x1c5   :  { %s327_s24 = smov 128   ;;  %s328_s25 = smov 8  }
 0x1c6   :  { %225 = dma.vmem_to_hbm [thread:$0]  %s220_s17, 256, %s418_s5, [#allocation3], %s327_s24, %s327_s24, %s328_s25  }
 0x1c7   :  { %322 = dma.done.wait [#allocation3], 256  }
 0x1c8   :  { %323 = vsyncadd [#allocation3], 4294967040 }
 0x1c9   :  { %229 = vsyncpa [#allocation3], 1 }

</bundles_post_ra>
